<compile_context>
chip_gen: v5e
topology: v5e:2x2
jax: 0.10.0
libtpu: 0.0.40
codegen_flags: <defaults>
</compile_context>

<pallas_src>
import jax
import jax.numpy as jnp
from jax import lax
from jax.experimental import pallas as pl
from jax.experimental.pallas import tpu as pltpu


_BN_EPS = 1e-5
_VMEM_LIMIT = 48 * 1024 * 1024        # fits v7x (64 MiB phys) and v5e/v6e (128 MiB)
_VMEM_TILE_BUDGET = 24 * 1024 * 1024  # buffer budget used when picking M tiles
_MAX_M_TILE = 2048                    # bounds live f32 copies in stats/epilogue


def _largest_tile(total, cap, multiple=128):
    """Largest divisor of `total` that is a multiple of `multiple` and <= cap."""
    best = None
    t = multiple
    cap = min(cap, total)
    while t <= cap:
        if total % t == 0:
            best = t
        t += multiple
    return best


def _pick_m_tile(m_total, k_pad, c_out):
    # Per output column: double-buffered bf16 patches + double-buffered f32 conv.
    per_col = 2 * (k_pad * 2) + 2 * (c_out * 4)
    cap = max(128, (_VMEM_TILE_BUDGET // per_col) // 128 * 128)
    cap = min(cap, _MAX_M_TILE)
    tile = _largest_tile(m_total, cap)
    if tile is None:
        return m_total  # tiny / ragged M: single resident tile (block == full dims)
    if tile == m_total and m_total >= 256:
        half = _largest_tile(m_total, m_total // 2)
        if half is not None:
            tile = half  # keep >= 2 grid steps so DMA/compute pipelining engages
    return tile


def _conv_stats_kernel(pt_ref, wt_ref, conv_ref, sum_ref, m2_ref):
    """Pass 1: 5x5 conv as one MXU matmul + per-tile BatchNorm statistics.

    pt_ref  : (Kpad, Mt)   bf16  im2col patches (M on the lane axis)
    wt_ref  : (Cout, Kpad) bf16  fused conv weights (zero-padded contraction)
    conv_ref: (Cout, Mt)   f32   conv output tile
    sum_ref : (1, Cout, 1) f32   per-tile channel sum
    m2_ref  : (1, Cout, 1) f32   per-tile centered sum of squares
    """
    acc = jnp.dot(wt_ref[...], pt_ref[...], preferred_element_type=jnp.float32)
    conv_ref[...] = acc
    inv_m = 1.0 / acc.shape[1]                       # static Python float
    s = jnp.sum(acc, axis=1, keepdims=True)          # (Cout, 1) lane reduce (XLU)
    d = acc - s * inv_m                              # center at the tile mean
    m2 = jnp.sum(d * d, axis=1, keepdims=True)       # well-conditioned variance piece
    sum_ref[...] = s[None]
    m2_ref[...] = m2[None]


def _bn_act_kernel(conv_ref, scale_ref, shift_ref, o_ref):
    """Pass 2: tanh(leaky_relu(conv*scale + shift, 0.2)); f32 VPU/EUP epilogue."""
    y = conv_ref[...] * scale_ref[...] + shift_ref[...]
    y = jnp.where(y >= 0.0, y, 0.2 * y)
    o_ref[...] = jnp.tanh(y).reshape(o_ref.shape).astype(o_ref.dtype)


@jax.jit
def unet2d_gan_finalconv(x_nchw, conv_w, conv_b, bn_gamma, bn_beta):
    """x: (N, Cin, H, W) f32.  conv_w: (Cout, Cin, 5, 5) OIHW (PyTorch).

    conv_b is accepted for interface fidelity but unused: under training-mode
    BatchNorm the conv bias cancels exactly (mean shift; variance unchanged).
    """
    del conv_b
    N, Cin, H, W = x_nchw.shape
    Cout = conv_w.shape[0]
    KH = KW = 5
    HW = H * W
    M = N * HW
    K = KH * KW * Cin
    Kpad = -(-K // 128) * 128  # align MXU contraction / bf16 packing

    # ---- prologue (layout only): pad, bf16 BEFORE the 25-tap blow-up ----------
    xpad = jnp.pad(x_nchw, ((0, 0), (0, 0), (2, 2), (2, 2))).astype(jnp.bfloat16)
    rows = [jnp.transpose(xpad[:, :, kh:kh + H, kw:kw + W],
                          (1, 0, 2, 3)).reshape(Cin, M)
            for kh in range(KH) for kw in range(KW)]
    if Kpad > K:
        rows.append(jnp.zeros((Kpad - K, M), jnp.bfloat16))
    patches = jnp.concatenate(rows, axis=0)                      # (Kpad, M) bf16
    w_t = jnp.transpose(conv_w, (0, 2, 3, 1)).reshape(Cout, K)
    w_t = jnp.pad(w_t, ((0, 0), (0, Kpad - K))).astype(jnp.bfloat16)

    cparams = pltpu.CompilerParams(dimension_semantics=("parallel",),
                                   vmem_limit_bytes=_VMEM_LIMIT)

    # ---- pass 1: conv matmul + per-tile stats (M-tiled, pipelined) -------------
    m_tile = _pick_m_tile(M, Kpad, Cout)
    n_tiles = M // m_tile
    cost1 = pl.CostEstimate(
        flops=int(2 * Cout * Kpad * M + 5 * Cout * M),
        transcendentals=0,
        bytes_accessed=int(Kpad * M * 2 + Cout * Kpad * 2 + Cout * M * 4
                           + 2 * n_tiles * Cout * 4))
    conv_cm, sums, m2s = pl.pallas_call(
        _conv_stats_kernel,
        grid=(n_tiles,),
        in_specs=[pl.BlockSpec((Kpad, m_tile), lambda i: (0, i)),
                  pl.BlockSpec((Cout, Kpad), lambda i: (0, 0))],
        out_specs=(pl.BlockSpec((Cout, m_tile), lambda i: (0, i)),
                   pl.BlockSpec((1, Cout, 1), lambda i: (i, 0, 0)),
                   pl.BlockSpec((1, Cout, 1), lambda i: (i, 0, 0))),
        out_shape=(jax.ShapeDtypeStruct((Cout, M), jnp.float32),
                   jax.ShapeDtypeStruct((n_tiles, Cout, 1), jnp.float32),
                   jax.ShapeDtypeStruct((n_tiles, Cout, 1), jnp.float32)),
        compiler_params=cparams,
        cost_estimate=cost1,
    )(patches, w_t)

    # ---- combine per-tile stats (tiny XLA op on (n_tiles, Cout)) ---------------
    sums = sums[:, :, 0]                                   # (nT, Cout)
    m2s = m2s[:, :, 0]
    mean = jnp.sum(sums, axis=0) / M                       # (Cout,)
    mean_t = sums / m_tile
    var = (jnp.sum(m2s, axis=0)
           + m_tile * jnp.sum((mean_t - mean[None, :]) ** 2, axis=0)) / M
    scale = (bn_gamma.astype(jnp.float32) * lax.rsqrt(var + _BN_EPS)).reshape(Cout, 1)
    shift = bn_beta.astype(jnp.float32).reshape(Cout, 1) - mean.reshape(Cout, 1) * scale

    # ---- pass 2: normalize + LeakyReLU + Tanh ----------------------------------
    cost2 = pl.CostEstimate(flops=int(6 * Cout * M),
                            transcendentals=int(Cout * M),
                            bytes_accessed=int(2 * Cout * M * 4))
    if HW % 128 == 0 or N == 1:
        # Emit (1, Cout, H*W) blocks -> free contiguous reshape to NCHW (no transpose).
        out = pl.pallas_call(
            _bn_act_kernel,
            grid=(N,),
            in_specs=[pl.BlockSpec((Cout, HW), lambda n: (0, n)),
                      pl.BlockSpec((Cout, 1), lambda n: (0, 0)),
                      pl.BlockSpec((Cout, 1), lambda n: (0, 0))],
            out_specs=pl.BlockSpec((1, Cout, HW), lambda n: (n, 0, 0)),
            out_shape=jax.ShapeDtypeStruct((N, Cout, HW), jnp.float32),
            compiler_params=cparams,
            cost_estimate=cost2,
        )(conv_cm, scale, shift)
        return out.reshape(N, Cout, H, W)

    # TODO(synk): ragged H*W fallback keeps the (Cout, M) layout and pays one XLA
    # transpose on the output; fold it into the kernel if this path ever matters.
    out_cm = pl.pallas_call(
        _bn_act_kernel,
        grid=(n_tiles,),
        in_specs=[pl.BlockSpec((Cout, m_tile), lambda i: (0, i)),
                  pl.BlockSpec((Cout, 1), lambda i: (0, 0)),
                  pl.BlockSpec((Cout, 1), lambda i: (0, 0))],
        out_specs=pl.BlockSpec((Cout, m_tile), lambda i: (0, i)),
        out_shape=jax.ShapeDtypeStruct((Cout, M), jnp.float32),
        compiler_params=cparams,
        cost_estimate=cost2,
    )(conv_cm, scale, shift)
    return jnp.transpose(out_cm.reshape(Cout, N, H, W), (1, 0, 2, 3))


def _reference(x_nchw, conv_w, conv_b, bn_gamma, bn_beta, *, bf16_conv):
    """Pure-JAX reference mirroring the PyTorch forward (training-mode BN)."""
    xw = x_nchw.astype(jnp.bfloat16) if bf16_conv else x_nchw
    ww = conv_w.astype(jnp.bfloat16) if bf16_conv else conv_w
    y = lax.conv_general_dilated(
        xw, ww, window_strides=(1, 1), padding=((2, 2), (2, 2)),
        dimension_numbers=("NCHW", "OIHW", "NCHW"),
        preferred_element_type=jnp.float32)
    y = y + conv_b[None, :, None, None]
    mean = jnp.mean(y, axis=(0, 2, 3), keepdims=True)
    var = jnp.mean((y - mean) ** 2, axis=(0, 2, 3), keepdims=True)
    y = (y - mean) * lax.rsqrt(var + _BN_EPS)
    y = y * bn_gamma[None, :, None, None] + bn_beta[None, :, None, None]
    y = jnp.where(y >= 0.0, y, 0.2 * y)
    return jnp.tanh(y)


if __name__ == "__main__":
    N, Cin, Cout, H, W = 2, 4, 8, 16, 16
    key = jax.random.PRNGKey(0)
    kx, kw, kb = jax.random.split(key, 3)

    x = jax.random.normal(kx, (N, Cin, H, W), dtype=jnp.float32)
    conv_w = jax.random.normal(kw, (Cout, Cin, 5, 5), dtype=jnp.float32) * 0.1
    conv_b = jax.random.normal(kb, (Cout,), dtype=jnp.float32) * 0.1
    bn_gamma = jnp.ones((Cout,), jnp.float32)   # PyTorch BN default init
    bn_beta = jnp.zeros((Cout,), jnp.float32)

    out = unet2d_gan_finalconv(x, conv_w, conv_b, bn_gamma, bn_beta)
    out = jax.block_until_ready(out)
    assert out.shape == (N, Cout, H, W)

    # Tight check vs. a reference with the same bf16 MXU operand precision.
    ref_bf16 = _reference(x, conv_w, conv_b, bn_gamma, bn_beta, bf16_conv=True)
    assert jnp.allclose(out, ref_bf16, atol=1e-4, rtol=1e-4), (
        float(jnp.max(jnp.abs(out - ref_bf16))))

    # Loose check vs. exact f32 PyTorch semantics (gap = bf16 conv-operand rounding).
    ref_f32 = _reference(x, conv_w, conv_b, bn_gamma, bn_beta, bf16_conv=False)
    assert jnp.allclose(out, ref_f32, atol=5e-2, rtol=0.0), (
        float(jnp.max(jnp.abs(out - ref_f32))))

    print("KERNEL_OK")
</pallas_src>

<mosaic_0001>
module attributes {stable_mosaic.version = 11 : i64} {
  func.func @_conv_stats_kernel(%arg0: i32, %arg1: memref<128x256xbf16, #tpu.memory_space<vmem>>, %arg2: memref<8x128xbf16, #tpu.memory_space<vmem>>, %arg3: memref<8x256xf32, #tpu.memory_space<vmem>>, %arg4: memref<1x8x1xf32, #tpu.memory_space<vmem>>, %arg5: memref<1x8x1xf32, #tpu.memory_space<vmem>>) attributes {dimension_semantics = [#tpu.dimension_semantics<parallel>], iteration_bounds = array<i64: 2>, scalar_prefetch = 0 : i64, scratch_operands = 0 : i64, tpu.core_type = #tpu.core_type<tc>, window_params = [{transform_indices = @transform_0, window_bounds = array<i64: 128, 256>}, {pipeline_mode = #tpu.pipeline_mode<synchronous>, transform_indices = @transform_1, window_bounds = array<i64: 8, 128>}, {transform_indices = @transform_2, window_bounds = array<i64: 8, 256>}, {transform_indices = @transform_3, window_bounds = array<i64: 1, 8, 1>}, {transform_indices = @transform_4, window_bounds = array<i64: 1, 8, 1>}]} {
    %c0 = arith.constant 0 : index
    %c0_0 = arith.constant 0 : index
    %0 = vector.load %arg2[%c0, %c0_0] : memref<8x128xbf16, #tpu.memory_space<vmem>>, vector<8x128xbf16>
    %c0_1 = arith.constant 0 : index
    %c0_2 = arith.constant 0 : index
    %1 = vector.load %arg1[%c0_1, %c0_2] : memref<128x256xbf16, #tpu.memory_space<vmem>>, vector<128x256xbf16>
    %cst = arith.constant dense<0.000000e+00> : vector<8x256xf32>
    %2 = tpu.matmul %0, %1, %cst {dimension_numbers = #tpu.dot_dimension_numbers<[1], [0], [0], [1], [0, 0, 1, 1], [], []>} : vector<8x128xbf16>, vector<128x256xbf16>, vector<8x256xf32> -> vector<8x256xf32>
    %c0_3 = arith.constant 0 : index
    %c0_4 = arith.constant 0 : index
    %3 = vector.load %arg3[%c0_3, %c0_4] : memref<8x256xf32, #tpu.memory_space<vmem>>, vector<8x256xf32>
    tpu.vector_store %arg3[%c0_3, %c0_4], %2 {strides = array<i32>} : memref<8x256xf32, #tpu.memory_space<vmem>>, vector<8x256xf32>,
    %cst_5 = arith.constant dense<0.000000e+00> : vector<8xf32>
    %4 = vector.multi_reduction <add>, %2, %cst_5 [1] : vector<8x256xf32> to vector<8xf32>
    %5 = vector.shape_cast %4 : vector<8xf32> to vector<8x1xf32>
    %cst_6 = arith.constant 3.906250e-03 : f32
    %6 = vector.broadcast %cst_6 : f32 to vector<8x1xf32>
    %7 = arith.mulf %5, %6 : vector<8x1xf32>
    %8 = vector.broadcast %7 : vector<8x1xf32> to vector<8x256xf32>
    %9 = arith.subf %2, %8 : vector<8x256xf32>
    %10 = arith.mulf %9, %9 : vector<8x256xf32>
    %cst_7 = arith.constant dense<0.000000e+00> : vector<8xf32>
    %11 = vector.multi_reduction <add>, %10, %cst_7 [1] : vector<8x256xf32> to vector<8xf32>
    %12 = vector.shape_cast %11 : vector<8xf32> to vector<8x1xf32>
    %13 = vector.shape_cast %5 : vector<8x1xf32> to vector<1x8x1xf32>
    %c0_8 = arith.constant 0 : index
    %c0_9 = arith.constant 0 : index
    %c0_10 = arith.constant 0 : index
    %14 = vector.load %arg4[%c0_8, %c0_9, %c0_10] : memref<1x8x1xf32, #tpu.memory_space<vmem>>, vector<1x8x1xf32>
    tpu.vector_store %arg4[%c0_8, %c0_9, %c0_10], %13 {strides = array<i32>} : memref<1x8x1xf32, #tpu.memory_space<vmem>>, vector<1x8x1xf32>,
    %15 = vector.shape_cast %12 : vector<8x1xf32> to vector<1x8x1xf32>
    %c0_11 = arith.constant 0 : index
    %c0_12 = arith.constant 0 : index
    %c0_13 = arith.constant 0 : index
    %16 = vector.load %arg5[%c0_11, %c0_12, %c0_13] : memref<1x8x1xf32, #tpu.memory_space<vmem>>, vector<1x8x1xf32>
    tpu.vector_store %arg5[%c0_11, %c0_12, %c0_13], %15 {strides = array<i32>} : memref<1x8x1xf32, #tpu.memory_space<vmem>>, vector<1x8x1xf32>,
    return
  }
  func.func @transform_0(%arg0: i32) -> (i32, i32) {
    %c0_i32 = arith.constant 0 : i32
    %c0_i32_0 = arith.constant 0 : i32
    return %c0_i32, %arg0 : i32, i32
  }
  func.func @transform_1(%arg0: i32) -> (i32, i32) {
    %c0_i32 = arith.constant 0 : i32
    %c0_i32_0 = arith.constant 0 : i32
    %c0_i32_1 = arith.constant 0 : i32
    return %c0_i32, %c0_i32_0 : i32, i32
  }
  func.func @transform_2(%arg0: i32) -> (i32, i32) {
    %c0_i32 = arith.constant 0 : i32
    %c0_i32_0 = arith.constant 0 : i32
    return %c0_i32, %arg0 : i32, i32
  }
  func.func @transform_3(%arg0: i32) -> (i32, i32, i32) {
    %c0_i32 = arith.constant 0 : i32
    %c0_i32_0 = arith.constant 0 : i32
    %c0_i32_1 = arith.constant 0 : i32
    return %arg0, %c0_i32, %c0_i32_0 : i32, i32, i32
  }
  func.func @transform_4(%arg0: i32) -> (i32, i32, i32) {
    %c0_i32 = arith.constant 0 : i32
    %c0_i32_0 = arith.constant 0 : i32
    %c0_i32_1 = arith.constant 0 : i32
    return %arg0, %c0_i32, %c0_i32_0 : i32, i32, i32
  }
}

module attributes {stable_mosaic.version = 11 : i64} {
  func.func @_bn_act_kernel(%arg0: i32, %arg1: memref<8x256xf32, #tpu.memory_space<vmem>>, %arg2: memref<8x1xf32, #tpu.memory_space<vmem>>, %arg3: memref<8x1xf32, #tpu.memory_space<vmem>>, %arg4: memref<1x8x256xf32, #tpu.memory_space<vmem>>) attributes {dimension_semantics = [#tpu.dimension_semantics<parallel>], iteration_bounds = array<i64: 2>, scalar_prefetch = 0 : i64, scratch_operands = 0 : i64, tpu.core_type = #tpu.core_type<tc>, window_params = [{transform_indices = @transform_0, window_bounds = array<i64: 8, 256>}, {pipeline_mode = #tpu.pipeline_mode<synchronous>, transform_indices = @transform_1, window_bounds = array<i64: 8, 1>}, {pipeline_mode = #tpu.pipeline_mode<synchronous>, transform_indices = @transform_2, window_bounds = array<i64: 8, 1>}, {transform_indices = @transform_3, window_bounds = array<i64: 1, 8, 256>}]} {
    %c0 = arith.constant 0 : index
    %c0_0 = arith.constant 0 : index
    %0 = vector.load %arg1[%c0, %c0_0] : memref<8x256xf32, #tpu.memory_space<vmem>>, vector<8x256xf32>
    %c0_1 = arith.constant 0 : index
    %c0_2 = arith.constant 0 : index
    %1 = vector.load %arg2[%c0_1, %c0_2] : memref<8x1xf32, #tpu.memory_space<vmem>>, vector<8x1xf32>
    %2 = vector.broadcast %1 : vector<8x1xf32> to vector<8x256xf32>
    %3 = arith.mulf %0, %2 : vector<8x256xf32>
    %c0_3 = arith.constant 0 : index
    %c0_4 = arith.constant 0 : index
    %4 = vector.load %arg3[%c0_3, %c0_4] : memref<8x1xf32, #tpu.memory_space<vmem>>, vector<8x1xf32>
    %5 = vector.broadcast %4 : vector<8x1xf32> to vector<8x256xf32>
    %6 = arith.addf %3, %5 : vector<8x256xf32>
    %cst = arith.constant 0.000000e+00 : f32
    %7 = vector.broadcast %cst : f32 to vector<8x256xf32>
    %8 = arith.cmpf oge, %6, %7 : vector<8x256xf32>
    %cst_5 = arith.constant 2.000000e-01 : f32
    %9 = vector.broadcast %cst_5 : f32 to vector<8x256xf32>
    %10 = arith.mulf %9, %6 : vector<8x256xf32>
    %11 = arith.select %8, %6, %10 : vector<8x256xi1>, vector<8x256xf32>
    %12 = math.tanh %11 : vector<8x256xf32>
    %13 = vector.shape_cast %12 : vector<8x256xf32> to vector<1x8x256xf32>
    %c0_6 = arith.constant 0 : index
    %c0_7 = arith.constant 0 : index
    %c0_8 = arith.constant 0 : index
    %14 = vector.load %arg4[%c0_6, %c0_7, %c0_8] : memref<1x8x256xf32, #tpu.memory_space<vmem>>, vector<1x8x256xf32>
    tpu.vector_store %arg4[%c0_6, %c0_7, %c0_8], %13 {strides = array<i32>} : memref<1x8x256xf32, #tpu.memory_space<vmem>>, vector<1x8x256xf32>,
    return
  }
  func.func @transform_0(%arg0: i32) -> (i32, i32) {
    %c0_i32 = arith.constant 0 : i32
    %c0_i32_0 = arith.constant 0 : i32
    return %c0_i32, %arg0 : i32, i32
  }
  func.func @transform_1(%arg0: i32) -> (i32, i32) {
    %c0_i32 = arith.constant 0 : i32
    %c0_i32_0 = arith.constant 0 : i32
    %c0_i32_1 = arith.constant 0 : i32
    return %c0_i32, %c0_i32_0 : i32, i32
  }
  func.func @transform_2(%arg0: i32) -> (i32, i32) {
    %c0_i32 = arith.constant 0 : i32
    %c0_i32_0 = arith.constant 0 : i32
    %c0_i32_1 = arith.constant 0 : i32
    return %c0_i32, %c0_i32_0 : i32, i32
  }
  func.func @transform_3(%arg0: i32) -> (i32, i32, i32) {
    %c0_i32 = arith.constant 0 : i32
    %c0_i32_0 = arith.constant 0 : i32
    %c0_i32_1 = arith.constant 0 : i32
    return %arg0, %c0_i32, %c0_i32_0 : i32, i32, i32
  }
}

</mosaic_0001>

<bundles_post_ra>
// kernel: unet2d_gan_finalconv.3
= control target key start
LH: loop header
LB: loop body
LE: loop exit
PB: predicated region body
PF: predicated region fallthrough
CT: control target
= control target key end

     0   :  { %s311_s12 = smov 0   ;;  %s334_s0 = inlined_call_operand.vmem [shape: f32[8,512], index: 0, kind: input, shape index: {}]   ;;  %s335_s1 = inlined_call_operand.vmem [shape: f32[8,1], index: 1, kind: input, shape index: {}]   ;;  %s336_s2 = inlined_call_operand.vmem [shape: f32[8,1], index: 2, kind: input, shape index: {}]   ;;  %s337_s3 = inlined_call_operand.vmem [shape: f32[2,8,256], index: 3, kind: output, shape index: {}]  }
   0x1 LB: > { %s256_s13 = sadd.s32 4294967295, %s288_s12   ;;  %p260_p0 = scmp.ge.s32.totalorder %s288_s12, 1  ;;  %s288_s12 = sphi %s311_s12, %s13_s12  }
   0x2   : > { %p138_p1 = scmp.lt.s32.totalorder %s288_s12, 3 }
   0x4   : > { %p139_p2 = pnand %p260_p0, %p138_p1 }
   0x5   : > { %s261_s18 = sshll.u32 (!%p139_p2), %s256_s13, 1  ;;  %p168_p4 = scmp.lt.s32.totalorder (!%p139_p2), %s256_s13, 1 }
   0x6   : > { %142 = sbr.rel (%p139_p2) target bundleno = 150 (0x96), region = 32  ;;  %p163_p3 = scmp.lt.s32.totalorder (!%p139_p2), %s261_s18, 3 }
   0xb   : > { %v175_v0 = vld [vmem:[%s335_s1] sm:$0xff]  ;;  %v290_v1 = vmov 0   ;;  %s339_s18 = smov (!%p163_p3, %s261_s18), 3  ;;  %s341_s13 = smov (!%p168_p4, %s256_s13), 1 }
   0xc   : > { %277 = vset.pattern.permute.xlu0 %v290_v1  ;;  %v183_v2 = vld [vmem:[%s336_s2] sm:$0xff]  ;;  %s262_s19 = sshll.u32 %s339_s18, 3  ;;  %s267_s23 = sshll.u32 %s341_s13, 4 }
   0xd   : > { %178 = vperm.xlu0 %277, %v175_v0   ;;  %s166_s22 = scalar_lea.vmem %s334_s0, %s262_s19  ;;  %s172_s26 = scalar_lea.vmem %s337_s3, %s267_s23 }
   0xe   : > { %v173_v4 = vld [vmem:[%s166_s22] sm:$0xff]  ;;  %v174_v5 = vld [vmem:[%s166_s22 + $0x8] sm:$0xff] }
  0x15   : > { %186 = vperm.xlu0 %277, %v183_v2  }
  0x7f   : > { %v179_v3 = vpop.permute.xlu0 %178 }
  0x80   : > { %v181_v6 = vmul.f32 %v179_v3, %v173_v4  ;;  %v182_v7 = vmul.f32 %v179_v3, %v174_v5 }
  0x87   : > { %v187_v8 = vpop.permute.xlu0 %186 }
  0x88   : > { %v189_v9 = vadd.f32 %v187_v8, %v181_v6  ;;  %v190_v10 = vadd.f32 %v187_v8, %v182_v7 }
  0x8a   : > { %vm191_vm0 = vcmp.ge.f32.partialorder %v189_v9, 0.0  ;;  %vm192_vm1 = vcmp.ge.f32.partialorder %v190_v10, 0.0  ;;  %v193_v11 = vmul.f32 0.2, %v189_v9  ;;  %v194_v12 = vmul.f32 0.2, %v190_v10 }
  0x8c   : > { %v195_v13 = vsel %vm191_vm0, %v189_v9, %v193_v11  ;;  %v196_v14 = vsel %vm192_vm1, %v190_v10, %v194_v12 }
  0x8d   : > { %278 = vtanh.f32 %v195_v13 }
  0x8e   : > { %280 = vtanh.f32 %v196_v14 }
  0x93   : > { %v279_v15 = vpop.eup %278 }
  0x94   : > { %v281_v16 = vpop.eup %280  ;;  %199 = vst [vmem:[%s172_s26] sm:$0xff] %v279_v15 }
  0x95   : > { %200 = vst [vmem:[%s172_s26 + $0x8] sm:$0xff] %v281_v16 }
  0x96 PF: > { %s13_s12 = sadd.s32 1, %s288_s12  }
  0x97   : > { %p10_p5 = scmp.ge.s32.totalorder %s13_s12, 4  }
  0x99   :  { %12 = sbr.rel (!%p10_p5) target bundleno = 1 (0x1), region = 62 }

// kernel: unet2d_gan_finalconv.2
= control target key start
LH: loop header
LB: loop body
LE: loop exit
PB: predicated region body
PF: predicated region fallthrough
CT: control target
= control target key end

     0   :  { %s749_s15 = smov 0   ;;  %s751_s16 = smov 0   ;;  %s865_s0 = inlined_call_operand.vmem [shape: bf16[128,512], index: 0, kind: input, shape index: {}]   ;;  %s866_s1 = inlined_call_operand.vmem [shape: bf16[8,128], index: 1, kind: input, shape index: {}]   ;;  %s867_s2 = inlined_call_operand.vmem [shape: f32[8,512], index: 2, kind: output, shape index: {0}]   ;;  %s868_s3 = inlined_call_operand.vmem [shape: f32[2,8,1], index: 3, kind: output, shape index: {1}]   ;;  %s869_s4 = inlined_call_operand.vmem [shape: f32[2,8,1], index: 4, kind: output, shape index: {2}]  }
   0x1   :  { %s753_s17 = smov 0  }
   0x2 LB: > { %s765_s18 = sadd.s32 4294967295, %s722_s17   ;;  %s768_s19 = sadd.s32 1, %s722_s17   ;;  %s722_s17 = sphi %s753_s17, %s872_s17   ;;  %s718_s16 = sphi %s751_s16, %s871_s16   ;;  %s714_s15 = sphi %s749_s15, %s870_s15  }
   0x3   : > { %s19_s20 = ssub.s32 %s722_s17, %s768_s19  ;;  %s22_s21 = sadd.s32 1, %s718_s16 }
   0x4   : > { %p20_p0 = scmp.eq.s32.totalorder %s19_s20, 0  ;;  %p29_p1 = scmp.ne.s32.totalorder %s718_s16, %s714_s15 }
   0x5   : > { %p30_p2 = scmp.eq.s32.totalorder %s722_s17, 0  ;;  %p583_p4 = scmp.ge.s32.totalorder %s722_s17, 2 }
   0x6   : > { %s777_s22 = scalar_select %p20_p0, %s718_s16, %s22_s21  }
   0x7   : > { %p31_p3 = por %p30_p2, %p29_p1  ;;  %157 = sbr.rel (%p583_p4) target bundleno = 32 (0x20), region = 20 }
   0xc   : > { %160 = sbr.rel (!%p31_p3) target bundleno = 32 (0x20), region = 24  ;;  %s162_s23 = sand.u32 (%p31_p3), 1, %s718_s16  }
   0xd   : > { %s659_s24 = sshll.u32 (%p31_p3), %s722_s17, 3  ;;  %s584_s25 = sshll.u32 (%p31_p3), %s162_s23, 7 }
   0xe   : > { %s785_s28 = scalar_lea.vmem (%p31_p3), %s865_s0, %s659_s24  ;;  %s164_s29 = scalar_lea.vmem (%p31_p3), [#allocation2], %s584_s25 }
   0xf   : > { %v226_v0 = vld [vmem:[%s785_s28] sm:$0xff] (%p31_p3)  ;;  %v228_v1 = vld [vmem:[%s785_s28 + $0x10] sm:$0xff] (%p31_p3) }
  0x10   : > { %v230_v2 = vld [vmem:[%s785_s28 + $0x20] sm:$0xff] (%p31_p3)  ;;  %227 = vst [vmem:[%s164_s29] sm:$0xff] (%p31_p3), %v226_v0  ;;  %v232_v3 = vld [vmem:[%s785_s28 + $0x30] sm:$0xff] (%p31_p3) }
  0x11   : > { %229 = vst [vmem:[%s164_s29 + $0x8] sm:$0xff] %v228_v1  ;;  %v234_v4 = vld [vmem:[%s785_s28 + $0x40] sm:$0xff]  ;;  %v236_v5 = vld [vmem:[%s785_s28 + $0x50] sm:$0xff] }
  0x12   : > { %231 = vst [vmem:[%s164_s29 + $0x10] sm:$0xff] %v230_v2  ;;  %v238_v6 = vld [vmem:[%s785_s28 + $0x60] sm:$0xff]  ;;  %v240_v7 = vld [vmem:[%s785_s28 + $0x70] sm:$0xff] }
  0x13   : > { %233 = vst [vmem:[%s164_s29 + $0x18] sm:$0xff] %v232_v3  ;;  %v242_v8 = vld [vmem:[%s785_s28 + $0x80] sm:$0xff]  ;;  %v244_v9 = vld [vmem:[%s785_s28 + $0x90] sm:$0xff] }
  0x14   : > { %235 = vst [vmem:[%s164_s29 + $0x20] sm:$0xff] %v234_v4  ;;  %v246_v10 = vld [vmem:[%s785_s28 + $0xa0] sm:$0xff]  ;;  %v248_v11 = vld [vmem:[%s785_s28 + $0xb0] sm:$0xff] }
  0x15   : > { %237 = vst [vmem:[%s164_s29 + $0x28] sm:$0xff] %v236_v5  ;;  %v250_v12 = vld [vmem:[%s785_s28 + $0xc0] sm:$0xff]  ;;  %v252_v13 = vld [vmem:[%s785_s28 + $0xd0] sm:$0xff] }
  0x16   : > { %239 = vst [vmem:[%s164_s29 + $0x30] sm:$0xff] %v238_v6  ;;  %v254_v14 = vld [vmem:[%s785_s28 + $0xe0] sm:$0xff]  ;;  %v256_v15 = vld [vmem:[%s785_s28 + $0xf0] sm:$0xff] }
  0x17   : > { %241 = vst [vmem:[%s164_s29 + $0x38] sm:$0xff] %v240_v7 }
  0x18   : > { %243 = vst [vmem:[%s164_s29 + $0x40] sm:$0xff] %v242_v8 }
  0x19   : > { %245 = vst [vmem:[%s164_s29 + $0x48] sm:$0xff] %v244_v9 }
  0x1a   : > { %247 = vst [vmem:[%s164_s29 + $0x50] sm:$0xff] %v246_v10 }
  0x1b   : > { %249 = vst [vmem:[%s164_s29 + $0x58] sm:$0xff] %v248_v11 }
  0x1c   : > { %251 = vst [vmem:[%s164_s29 + $0x60] sm:$0xff] %v250_v12 }
  0x1d   : > { %253 = vst [vmem:[%s164_s29 + $0x68] sm:$0xff] %v252_v13 }
  0x1e   : > { %255 = vst [vmem:[%s164_s29 + $0x70] sm:$0xff] %v254_v14 }
  0x1f   : > { %257 = vst [vmem:[%s164_s29 + $0x78] sm:$0xff] %v256_v15 }
  0x20 PF: > { %p587_p5 = scmp.ge.s32.totalorder %s722_s17, 1  ;;  %p262_p6 = scmp.lt.s32.totalorder %s722_s17, 3 }
  0x22   : > { %p263_p7 = pnand %p587_p5, %p262_p6 }
  0x23   : > { %s269_s30 = sand.u32 (!%p263_p7), 1, %s714_s15   ;;  %s589_s9 = sshll.u32 (!%p263_p7), %s765_s18, 1 }
  0x24   : > { %266 = sbr.rel (%p263_p7) target bundleno = 445 (0x1bd), region = 62  ;;  %s588_s5 = sshll.u32 (!%p263_p7), %s269_s30, 7 }
  0x25   : > { %s806_s6 = scalar_lea.vmem (!%p263_p7), [#allocation2], %s588_s5  ;;  %p304_p8 = scmp.lt.s32.totalorder (!%p263_p7), %s589_s9, 3 }
  0x26   : > { %p309_p9 = scmp.lt.s32.totalorder (!%p263_p7), %s765_s18, 1 }
  0x29   : > { %v651_v16 = vld [vmem:[%s806_s6 + $0x70] sm:$0xf]  ;;  %v675_v17 = vld [vmem:[%s806_s6 + $0x74] sm:$0xf0]  ;;  %v674_v18 = vld [vmem:[%s806_s6 + $0x74] sm:$0xf] }
  0x2a   : > { %v652_v19 = vor.u32 %v675_v17, %v651_v16  ;;  %v653_v20 = vld [vmem:[%s806_s6 + $0x78] sm:$0xf0]  ;;  %v643_v21 = vld [vmem:[%s806_s6 + $0x60] sm:$0xf]  ;;  %v673_v22 = vld [vmem:[%s806_s6 + $0x64] sm:$0xf0] }
  0x2b   : > { %v656_v23 = vor.u32 %v674_v18, %v653_v20  ;;  %v672_v24 = vld [vmem:[%s806_s6 + $0x64] sm:$0xf]  ;;  %v645_v25 = vld [vmem:[%s806_s6 + $0x68] sm:$0xf0]  ;;  %v644_v26 = vor.u32 %v673_v22, %v643_v21  ;;  %v635_v28 = vld [vmem:[%s806_s6 + $0x50] sm:$0xf] }
  0x2c   : > { %414 = vmatpush.bf16.msra.mxu0 %v652_v19  ;;  %v648_v27 = vor.u32 %v672_v24, %v645_v25  ;;  %v671_v29 = vld [vmem:[%s806_s6 + $0x54] sm:$0xf0]  ;;  %v670_v30 = vld [vmem:[%s806_s6 + $0x54] sm:$0xf]  ;;  %v637_v31 = vld [vmem:[%s806_s6 + $0x58] sm:$0xf0] }
  0x2d   : > { %427 = vmatpush.bf16.msra.mxu1 %v656_v23  ;;  %v636_v32 = vor.u32 %v671_v29, %v635_v28  ;;  %v640_v33 = vor.u32 %v670_v30, %v637_v31  ;;  %v627_v34 = vld [vmem:[%s806_s6 + $0x40] sm:$0xf]  ;;  %v669_v35 = vld [vmem:[%s806_s6 + $0x44] sm:$0xf0]  ;;  %v668_v36 = vld [vmem:[%s806_s6 + $0x44] sm:$0xf] }
  0x2e   : > { %v629_v37 = vld [vmem:[%s806_s6 + $0x48] sm:$0xf0]  ;;  %v628_v38 = vor.u32 %v669_v35, %v627_v34  ;;  %v619_v40 = vld [vmem:[%s806_s6 + $0x30] sm:$0xf]  ;;  %v667_v41 = vld [vmem:[%s806_s6 + $0x34] sm:$0xf0] }
  0x2f   : > { %v632_v39 = vor.u32 %v668_v36, %v629_v37  ;;  %v666_v42 = vld [vmem:[%s806_s6 + $0x34] sm:$0xf]  ;;  %v621_v43 = vld [vmem:[%s806_s6 + $0x38] sm:$0xf0]  ;;  %v620_v44 = vor.u32 %v667_v41, %v619_v40  ;;  %v611_v46 = vld [vmem:[%s806_s6 + $0x20] sm:$0xf] }
  0x30   : > { %415 = vmatpush.bf16.msra.mxu0 %v644_v26  ;;  %v624_v45 = vor.u32 %v666_v42, %v621_v43  ;;  %v665_v47 = vld [vmem:[%s806_s6 + $0x24] sm:$0xf0]  ;;  %v664_v48 = vld [vmem:[%s806_s6 + $0x24] sm:$0xf]  ;;  %v613_v49 = vld [vmem:[%s806_s6 + $0x28] sm:$0xf0] }
  0x31   : > { %428 = vmatpush.bf16.msra.mxu1 %v648_v27  ;;  %v612_v50 = vor.u32 %v665_v47, %v611_v46  ;;  %v616_v51 = vor.u32 %v664_v48, %v613_v49  ;;  %v603_v52 = vld [vmem:[%s806_s6 + $0x10] sm:$0xf]  ;;  %v663_v53 = vld [vmem:[%s806_s6 + $0x14] sm:$0xf0]  ;;  %v662_v54 = vld [vmem:[%s806_s6 + $0x14] sm:$0xf] }
  0x32   : > { %v605_v55 = vld [vmem:[%s806_s6 + $0x18] sm:$0xf0]  ;;  %v604_v56 = vor.u32 %v663_v53, %v603_v52  ;;  %v595_v58 = vld [vmem:[%s806_s6] sm:$0xf]  ;;  %v661_v59 = vld [vmem:[%s806_s6 + $0x4] sm:$0xf0] }
  0x33   : > { %v608_v57 = vor.u32 %v662_v54, %v605_v55  ;;  %v660_v60 = vld [vmem:[%s806_s6 + $0x4] sm:$0xf]  ;;  %v597_v61 = vld [vmem:[%s806_s6 + $0x8] sm:$0xf0]  ;;  %v596_v62 = vor.u32 %v661_v59, %v595_v58  ;;  %v317_v0 = vld [vmem:[%s866_s1] sm:$0xf] }
  0x34   : > { %416 = vmatpush.bf16.msra.mxu0 %v636_v32  ;;  %v600_v63 = vor.u32 %v660_v60, %v597_v61  ;;  %s874_s9 = smov (!%p304_p8, %s589_s9), 3  ;;  %s876_s18 = smov (!%p309_p9, %s765_s18), 1  ;;  %vm453_vm0 = vcmask 7168  }
  0x35   : > { %429 = vmatpush.bf16.msra.mxu1 %v640_v33  ;;  %s590_s10 = sshll.u32 %s874_s9, 3  ;;  %s591_s14 = sshll.u32 %s876_s18, 3 }
  0x36   : > { %s307_s13 = scalar_lea.vmem %s867_s2, %s590_s10  ;;  %s312_s20 = scalar_lea.vmem %s868_s3, %s591_s14 }
  0x37   : > { %s316_s24 = scalar_lea.vmem %s869_s4, %s591_s14 }
  0x38   : > { %417 = vmatpush.bf16.msra.mxu0 %v628_v38 }
  0x39   : > { %430 = vmatpush.bf16.msra.mxu1 %v632_v39 }
  0x3c   : > { %418 = vmatpush.bf16.msra.mxu0 %v620_v44 }
  0x3d   : > { %431 = vmatpush.bf16.msra.mxu1 %v624_v45 }
  0x40   : > { %419 = vmatpush.bf16.msra.mxu0 %v612_v50 }
  0x41   : > { %432 = vmatpush.bf16.msra.mxu1 %v616_v51 }
  0x44   : > { %420 = vmatpush.bf16.msra.mxu0 %v604_v56 }
  0x45   : > { %433 = vmatpush.bf16.msra.mxu1 %v608_v57 }
  0x48   : > { %421 = vmatpush.bf16.msra.mxu0 %v596_v62 }
  0x49   : > { %434 = vmatpush.bf16.msra.mxu1 %v600_v63 }
  0x4b   : > { %422 = vmatmul.bf16.vlgmr.msra.gmra.mxu0 %v317_v0 }
  0x4c   : > { %435 = vmatmul.bf16.vlgmr.msra.gmra.mxu1 %v317_v0 }
  0xc8   : > { %v423_v1 = vpop.f32.mrf.mxu0 }
  0xc9   : > { %440 = vst [vmem:[%s307_s13] sm:$0xff] %v423_v1  ;;  %v436_v2 = vpop.f32.mrf.mxu1 }
  0xca   : > { %441 = vst [vmem:[%s307_s13 + $0x8] sm:$0xff] %v436_v2  ;;  %v442_v3 = vadd.f32 %v436_v2, %v423_v1 }
  0xcc   : > { %443 = vadd.xlane.f32.xlu0 %v442_v3 }
  0xd0   : > { %v425_v4 = vpop.f32.mrf.mxu0 }
  0xd1   : > { %v438_v5 = vpop.f32.mrf.mxu1 }
 0x13f   : > { %v444_v6 = vpop.xlane.xlu0 %443 }
 0x140   : > { %v445_v7 = vmul.f32 0.00390625, %v444_v6  ;;  %454 = vst.msk [vmem:[%s312_s20] sm:$0xff] %vm453_vm0, %v444_v6 }
 0x142   : > { %v446_v8 = vsub.f32 %v423_v1, %v445_v7  ;;  %v447_v9 = vsub.f32 %v436_v2, %v445_v7 }
 0x144   : > { %v448_v10 = vmul.f32 %v446_v8, %v446_v8  ;;  %v449_v11 = vmul.f32 %v447_v9, %v447_v9 }
 0x146   : > { %v450_v12 = vadd.f32 %v449_v11, %v448_v10 }
 0x148   : > { %451 = vadd.xlane.f32.xlu0 %v450_v12 }
 0x1bb   : > { %v452_v13 = vpop.xlane.xlu0 %451 }
 0x1bc   : > { %455 = vst.msk [vmem:[%s316_s24] sm:$0xff] %vm453_vm0, %v452_v13 }
 0x1bd PF: > { %p12_p10 = scmp.ge.s32.totalorder %s768_s19, 4   ;;  %s870_s15 = smov %s718_s16 }
 0x1be   : > { %s871_s16 = smov %s777_s22  ;;  %s872_s17 = smov %s768_s19 }
 0x1bf   :  { %14 = sbr.rel (!%p12_p10) target bundleno = 2 (0x2), region = 125 }

</bundles_post_ra>
